<compile_context>
chip_gen: v6e
topology: v6e:2x2x1
jax: 0.10.0
libtpu: 0.0.40
codegen_flags: <defaults>
</compile_context>

<pallas_src>
import jax
import jax.numpy as jnp
from jax.experimental import pallas as pl
from jax.experimental.pallas import tpu as pltpu

STATE_DIM = 2      # MountainCar-v0 observation dim
HIDDEN = 12        # hard-coded in the module
ACTION_DIM = 3     # MountainCar-v0 action dim
LANES = 128        # native lane width

# Offsets inside the flat (75,) f32 parameter vector (SMEM).
_W1 = 0                                  # w1 (STATE_DIM, HIDDEN) row-major: 24
_B1 = _W1 + STATE_DIM * HIDDEN           # b1 (HIDDEN,)                     : 12
_W2 = _B1 + HIDDEN                       # w2 (HIDDEN, ACTION_DIM) row-major: 36
_B2 = _W2 + HIDDEN * ACTION_DIM          # b2 (ACTION_DIM,)                 : 3
PARAM_COUNT = _B2 + ACTION_DIM           # 75


def actor_net_kernel(p_ref, x_ref, o_ref):
    """p_ref: (75,) f32 in SMEM (scalar-prefetched params).
    x_ref: (STATE_DIM, TS, 128) f32 block -- batch on sublanes x lanes.
    o_ref: (ACTION_DIM, TS, 128) f32 block."""
    x0 = x_ref[0]                      # (TS, 128), fully dense vregs
    x1 = x_ref[1]

    # Interleave layer 1 and layer 2: each hidden unit h_j is produced with
    # SMEM-scalar FMAs, immediately folded into 2 independent partial
    # accumulators per output unit (6 chains of ILP), then dies.
    acc = [[None, None] for _ in range(ACTION_DIM)]
    for j in range(HIDDEN):            # unrolled at trace time
        hj = jnp.maximum(
            x0 * p_ref[_W1 + j]
            + x1 * p_ref[_W1 + HIDDEN + j]
            + p_ref[_B1 + j],
            0.0)                       # F.relu
        slot = j & 1
        for a in range(ACTION_DIM):
            term = hj * p_ref[_W2 + j * ACTION_DIM + a]
            acc[a][slot] = term if acc[a][slot] is None else acc[a][slot] + term

    for a in range(ACTION_DIM):
        o_ref[a] = acc[a][0] + acc[a][1] + p_ref[_B2 + a]


def pack_params(w1, b1, w2, b2):
    """Pack nn.Linear params (stored pre-transposed as (in, out)) into one
    flat (75,) f32 vector for SMEM scalar prefetch."""
    assert w1.shape == (STATE_DIM, HIDDEN), "w1 must be pre-transposed (in, out)"
    assert b1.shape == (HIDDEN,)
    assert w2.shape == (HIDDEN, ACTION_DIM), "w2 must be pre-transposed (in, out)"
    assert b2.shape == (ACTION_DIM,)
    return jnp.concatenate([
        w1.reshape(-1), b1.reshape(-1), w2.reshape(-1), b2.reshape(-1)
    ]).astype(jnp.float32)


def _round_up(x, m):
    return ((x + m - 1) // m) * m


def actor_net_forward(x, params_flat, *, block_sublanes=32):
    """x: (B, STATE_DIM) f32, params_flat: (75,) f32 from pack_params.
    Returns logits (B, ACTION_DIM) f32."""
    assert params_flat.shape == (PARAM_COUNT,)
    B = x.shape[0]
    assert x.shape == (B, STATE_DIM)
    block_sublanes = _round_up(max(int(block_sublanes), 8), 8)   # (8,128) rule

    # Batch maps to (sublane, lane) = (R, 128); R is a multiple of the tile ts.
    r_min = pl.cdiv(B, LANES)
    r8 = _round_up(max(r_min, 1), 8)
    ts = min(block_sublanes, r8)
    if r8 >= 16:                       # v7x: keep >= 2 grid steps so both TCs run
        ts = min(ts, _round_up(r8 // 2, 8))
    r = _round_up(r8, ts)
    bp = r * LANES

    # Feature-major, lane-dense input slab: (STATE_DIM, R, 128). Only useful
    # bytes (plus the small batch-tail pad) ever cross HBM.
    xt = jnp.zeros((STATE_DIM, bp), jnp.float32)
    xt = xt.at[:, :B].set(x.astype(jnp.float32).T)
    xt = xt.reshape(STATE_DIM, r, LANES)

    out = pl.pallas_call(
        actor_net_kernel,
        out_shape=jax.ShapeDtypeStruct((ACTION_DIM, r, LANES), jnp.float32),
        grid_spec=pltpu.PrefetchScalarGridSpec(
            num_scalar_prefetch=1,                 # params -> SMEM scalars
            grid=(r // ts,),
            in_specs=[
                pl.BlockSpec((STATE_DIM, ts, LANES), lambda i, p: (0, i, 0)),
            ],
            out_specs=pl.BlockSpec((ACTION_DIM, ts, LANES), lambda i, p: (0, i, 0)),
        ),
        compiler_params=pltpu.CompilerParams(
            dimension_semantics=("parallel",)),    # shards batch across TCs on v7x
    )(params_flat, xt)

    return out.reshape(ACTION_DIM, bp)[:, :B].T


def init_params(key):
    """Deterministic init mimicking nn.Linear's uniform(-1/sqrt(fan_in), +)."""
    k1, k2, k3, k4 = jax.random.split(key, 4)
    bound1 = 1.0 / jnp.sqrt(STATE_DIM)
    bound2 = 1.0 / jnp.sqrt(HIDDEN)
    # Stored already transposed: (in, out)
    w1 = jax.random.uniform(k1, (STATE_DIM, HIDDEN), jnp.float32, -bound1, bound1)
    b1 = jax.random.uniform(k2, (HIDDEN,), jnp.float32, -bound1, bound1)
    w2 = jax.random.uniform(k3, (HIDDEN, ACTION_DIM), jnp.float32, -bound2, bound2)
    b2 = jax.random.uniform(k4, (ACTION_DIM,), jnp.float32, -bound2, bound2)
    return w1, b1, w2, b2


def reference_forward(x, w1, b1, w2, b2):
    h = jnp.maximum(x @ w1 + b1[None, :], 0.0)
    return h @ w2 + b2[None, :]


if __name__ == "__main__":
    key = jax.random.PRNGKey(0)
    k_params, k_x = jax.random.split(key)
    w1, b1, w2, b2 = init_params(k_params)
    params_flat = pack_params(w1, b1, w2, b2)

    batch = 8
    x = jax.random.normal(k_x, (batch, STATE_DIM), jnp.float32)

    out = actor_net_forward(x, params_flat)
    out = jax.block_until_ready(out)

    ref = reference_forward(x, w1, b1, w2, b2)
    assert out.shape == (batch, ACTION_DIM)
    assert jnp.allclose(out, ref, atol=1e-5, rtol=1e-5)

    print("KERNEL_OK")
</pallas_src>

<mosaic_0001>
module attributes {stable_mosaic.version = 11 : i64} {
  func.func @actor_net_kernel(%arg0: i32, %arg1: memref<75xf32, #tpu.memory_space<smem>>, %arg2: memref<2x8x128xf32, #tpu.memory_space<vmem>>, %arg3: memref<3x8x128xf32, #tpu.memory_space<vmem>>) attributes {dimension_semantics = [#tpu.dimension_semantics<parallel>], iteration_bounds = array<i64: 1>, scalar_prefetch = 1 : i64, scratch_operands = 0 : i64, tpu.core_type = #tpu.core_type<tc>, window_params = [{transform_indices = @transform_0, window_bounds = array<i64: 2, 8, 128>}, {transform_indices = @transform_1, window_bounds = array<i64: 3, 8, 128>}]} {
    %c0 = arith.constant 0 : index
    %c0_0 = arith.constant 0 : index
    %c0_1 = arith.constant 0 : index
    %0 = vector.load %arg2[%c0, %c0_0, %c0_1] : memref<2x8x128xf32, #tpu.memory_space<vmem>>, vector<1x8x128xf32>
    %1 = vector.shape_cast %0 : vector<1x8x128xf32> to vector<8x128xf32>
    %c1 = arith.constant 1 : index
    %c0_2 = arith.constant 0 : index
    %c0_3 = arith.constant 0 : index
    %2 = vector.load %arg2[%c1, %c0_2, %c0_3] : memref<2x8x128xf32, #tpu.memory_space<vmem>>, vector<1x8x128xf32>
    %3 = vector.shape_cast %2 : vector<1x8x128xf32> to vector<8x128xf32>
    %c0_4 = arith.constant 0 : index
    %4 = memref.load %arg1[%c0_4] : memref<75xf32, #tpu.memory_space<smem>>
    %5 = vector.broadcast %4 : f32 to vector<8x128xf32>
    %6 = arith.mulf %1, %5 : vector<8x128xf32>
    %c12 = arith.constant 12 : index
    %7 = memref.load %arg1[%c12] : memref<75xf32, #tpu.memory_space<smem>>
    %8 = vector.broadcast %7 : f32 to vector<8x128xf32>
    %9 = arith.mulf %3, %8 : vector<8x128xf32>
    %10 = arith.addf %6, %9 : vector<8x128xf32>
    %c24 = arith.constant 24 : index
    %11 = memref.load %arg1[%c24] : memref<75xf32, #tpu.memory_space<smem>>
    %12 = vector.broadcast %11 : f32 to vector<8x128xf32>
    %13 = arith.addf %10, %12 : vector<8x128xf32>
    %cst = arith.constant 0.000000e+00 : f32
    %14 = vector.broadcast %cst : f32 to vector<8x128xf32>
    %15 = arith.maximumf %13, %14 : vector<8x128xf32>
    %c36 = arith.constant 36 : index
    %16 = memref.load %arg1[%c36] : memref<75xf32, #tpu.memory_space<smem>>
    %17 = vector.broadcast %16 : f32 to vector<8x128xf32>
    %18 = arith.mulf %15, %17 : vector<8x128xf32>
    %c37 = arith.constant 37 : index
    %19 = memref.load %arg1[%c37] : memref<75xf32, #tpu.memory_space<smem>>
    %20 = vector.broadcast %19 : f32 to vector<8x128xf32>
    %21 = arith.mulf %15, %20 : vector<8x128xf32>
    %c38 = arith.constant 38 : index
    %22 = memref.load %arg1[%c38] : memref<75xf32, #tpu.memory_space<smem>>
    %23 = vector.broadcast %22 : f32 to vector<8x128xf32>
    %24 = arith.mulf %15, %23 : vector<8x128xf32>
    %c1_5 = arith.constant 1 : index
    %25 = memref.load %arg1[%c1_5] : memref<75xf32, #tpu.memory_space<smem>>
    %26 = vector.broadcast %25 : f32 to vector<8x128xf32>
    %27 = arith.mulf %1, %26 : vector<8x128xf32>
    %c13 = arith.constant 13 : index
    %28 = memref.load %arg1[%c13] : memref<75xf32, #tpu.memory_space<smem>>
    %29 = vector.broadcast %28 : f32 to vector<8x128xf32>
    %30 = arith.mulf %3, %29 : vector<8x128xf32>
    %31 = arith.addf %27, %30 : vector<8x128xf32>
    %c25 = arith.constant 25 : index
    %32 = memref.load %arg1[%c25] : memref<75xf32, #tpu.memory_space<smem>>
    %33 = vector.broadcast %32 : f32 to vector<8x128xf32>
    %34 = arith.addf %31, %33 : vector<8x128xf32>
    %cst_6 = arith.constant 0.000000e+00 : f32
    %35 = vector.broadcast %cst_6 : f32 to vector<8x128xf32>
    %36 = arith.maximumf %34, %35 : vector<8x128xf32>
    %c39 = arith.constant 39 : index
    %37 = memref.load %arg1[%c39] : memref<75xf32, #tpu.memory_space<smem>>
    %38 = vector.broadcast %37 : f32 to vector<8x128xf32>
    %39 = arith.mulf %36, %38 : vector<8x128xf32>
    %c40 = arith.constant 40 : index
    %40 = memref.load %arg1[%c40] : memref<75xf32, #tpu.memory_space<smem>>
    %41 = vector.broadcast %40 : f32 to vector<8x128xf32>
    %42 = arith.mulf %36, %41 : vector<8x128xf32>
    %c41 = arith.constant 41 : index
    %43 = memref.load %arg1[%c41] : memref<75xf32, #tpu.memory_space<smem>>
    %44 = vector.broadcast %43 : f32 to vector<8x128xf32>
    %45 = arith.mulf %36, %44 : vector<8x128xf32>
    %c2 = arith.constant 2 : index
    %46 = memref.load %arg1[%c2] : memref<75xf32, #tpu.memory_space<smem>>
    %47 = vector.broadcast %46 : f32 to vector<8x128xf32>
    %48 = arith.mulf %1, %47 : vector<8x128xf32>
    %c14 = arith.constant 14 : index
    %49 = memref.load %arg1[%c14] : memref<75xf32, #tpu.memory_space<smem>>
    %50 = vector.broadcast %49 : f32 to vector<8x128xf32>
    %51 = arith.mulf %3, %50 : vector<8x128xf32>
    %52 = arith.addf %48, %51 : vector<8x128xf32>
    %c26 = arith.constant 26 : index
    %53 = memref.load %arg1[%c26] : memref<75xf32, #tpu.memory_space<smem>>
    %54 = vector.broadcast %53 : f32 to vector<8x128xf32>
    %55 = arith.addf %52, %54 : vector<8x128xf32>
    %cst_7 = arith.constant 0.000000e+00 : f32
    %56 = vector.broadcast %cst_7 : f32 to vector<8x128xf32>
    %57 = arith.maximumf %55, %56 : vector<8x128xf32>
    %c42 = arith.constant 42 : index
    %58 = memref.load %arg1[%c42] : memref<75xf32, #tpu.memory_space<smem>>
    %59 = vector.broadcast %58 : f32 to vector<8x128xf32>
    %60 = arith.mulf %57, %59 : vector<8x128xf32>
    %61 = arith.addf %18, %60 : vector<8x128xf32>
    %c43 = arith.constant 43 : index
    %62 = memref.load %arg1[%c43] : memref<75xf32, #tpu.memory_space<smem>>
    %63 = vector.broadcast %62 : f32 to vector<8x128xf32>
    %64 = arith.mulf %57, %63 : vector<8x128xf32>
    %65 = arith.addf %21, %64 : vector<8x128xf32>
    %c44 = arith.constant 44 : index
    %66 = memref.load %arg1[%c44] : memref<75xf32, #tpu.memory_space<smem>>
    %67 = vector.broadcast %66 : f32 to vector<8x128xf32>
    %68 = arith.mulf %57, %67 : vector<8x128xf32>
    %69 = arith.addf %24, %68 : vector<8x128xf32>
    %c3 = arith.constant 3 : index
    %70 = memref.load %arg1[%c3] : memref<75xf32, #tpu.memory_space<smem>>
    %71 = vector.broadcast %70 : f32 to vector<8x128xf32>
    %72 = arith.mulf %1, %71 : vector<8x128xf32>
    %c15 = arith.constant 15 : index
    %73 = memref.load %arg1[%c15] : memref<75xf32, #tpu.memory_space<smem>>
    %74 = vector.broadcast %73 : f32 to vector<8x128xf32>
    %75 = arith.mulf %3, %74 : vector<8x128xf32>
    %76 = arith.addf %72, %75 : vector<8x128xf32>
    %c27 = arith.constant 27 : index
    %77 = memref.load %arg1[%c27] : memref<75xf32, #tpu.memory_space<smem>>
    %78 = vector.broadcast %77 : f32 to vector<8x128xf32>
    %79 = arith.addf %76, %78 : vector<8x128xf32>
    %cst_8 = arith.constant 0.000000e+00 : f32
    %80 = vector.broadcast %cst_8 : f32 to vector<8x128xf32>
    %81 = arith.maximumf %79, %80 : vector<8x128xf32>
    %c45 = arith.constant 45 : index
    %82 = memref.load %arg1[%c45] : memref<75xf32, #tpu.memory_space<smem>>
    %83 = vector.broadcast %82 : f32 to vector<8x128xf32>
    %84 = arith.mulf %81, %83 : vector<8x128xf32>
    %85 = arith.addf %39, %84 : vector<8x128xf32>
    %c46 = arith.constant 46 : index
    %86 = memref.load %arg1[%c46] : memref<75xf32, #tpu.memory_space<smem>>
    %87 = vector.broadcast %86 : f32 to vector<8x128xf32>
    %88 = arith.mulf %81, %87 : vector<8x128xf32>
    %89 = arith.addf %42, %88 : vector<8x128xf32>
    %c47 = arith.constant 47 : index
    %90 = memref.load %arg1[%c47] : memref<75xf32, #tpu.memory_space<smem>>
    %91 = vector.broadcast %90 : f32 to vector<8x128xf32>
    %92 = arith.mulf %81, %91 : vector<8x128xf32>
    %93 = arith.addf %45, %92 : vector<8x128xf32>
    %c4 = arith.constant 4 : index
    %94 = memref.load %arg1[%c4] : memref<75xf32, #tpu.memory_space<smem>>
    %95 = vector.broadcast %94 : f32 to vector<8x128xf32>
    %96 = arith.mulf %1, %95 : vector<8x128xf32>
    %c16 = arith.constant 16 : index
    %97 = memref.load %arg1[%c16] : memref<75xf32, #tpu.memory_space<smem>>
    %98 = vector.broadcast %97 : f32 to vector<8x128xf32>
    %99 = arith.mulf %3, %98 : vector<8x128xf32>
    %100 = arith.addf %96, %99 : vector<8x128xf32>
    %c28 = arith.constant 28 : index
    %101 = memref.load %arg1[%c28] : memref<75xf32, #tpu.memory_space<smem>>
    %102 = vector.broadcast %101 : f32 to vector<8x128xf32>
    %103 = arith.addf %100, %102 : vector<8x128xf32>
    %cst_9 = arith.constant 0.000000e+00 : f32
    %104 = vector.broadcast %cst_9 : f32 to vector<8x128xf32>
    %105 = arith.maximumf %103, %104 : vector<8x128xf32>
    %c48 = arith.constant 48 : index
    %106 = memref.load %arg1[%c48] : memref<75xf32, #tpu.memory_space<smem>>
    %107 = vector.broadcast %106 : f32 to vector<8x128xf32>
    %108 = arith.mulf %105, %107 : vector<8x128xf32>
    %109 = arith.addf %61, %108 : vector<8x128xf32>
    %c49 = arith.constant 49 : index
    %110 = memref.load %arg1[%c49] : memref<75xf32, #tpu.memory_space<smem>>
    %111 = vector.broadcast %110 : f32 to vector<8x128xf32>
    %112 = arith.mulf %105, %111 : vector<8x128xf32>
    %113 = arith.addf %65, %112 : vector<8x128xf32>
    %c50 = arith.constant 50 : index
    %114 = memref.load %arg1[%c50] : memref<75xf32, #tpu.memory_space<smem>>
    %115 = vector.broadcast %114 : f32 to vector<8x128xf32>
    %116 = arith.mulf %105, %115 : vector<8x128xf32>
    %117 = arith.addf %69, %116 : vector<8x128xf32>
    %c5 = arith.constant 5 : index
    %118 = memref.load %arg1[%c5] : memref<75xf32, #tpu.memory_space<smem>>
    %119 = vector.broadcast %118 : f32 to vector<8x128xf32>
    %120 = arith.mulf %1, %119 : vector<8x128xf32>
    %c17 = arith.constant 17 : index
    %121 = memref.load %arg1[%c17] : memref<75xf32, #tpu.memory_space<smem>>
    %122 = vector.broadcast %121 : f32 to vector<8x128xf32>
    %123 = arith.mulf %3, %122 : vector<8x128xf32>
    %124 = arith.addf %120, %123 : vector<8x128xf32>
    %c29 = arith.constant 29 : index
    %125 = memref.load %arg1[%c29] : memref<75xf32, #tpu.memory_space<smem>>
    %126 = vector.broadcast %125 : f32 to vector<8x128xf32>
    %127 = arith.addf %124, %126 : vector<8x128xf32>
    %cst_10 = arith.constant 0.000000e+00 : f32
    %128 = vector.broadcast %cst_10 : f32 to vector<8x128xf32>
    %129 = arith.maximumf %127, %128 : vector<8x128xf32>
    %c51 = arith.constant 51 : index
    %130 = memref.load %arg1[%c51] : memref<75xf32, #tpu.memory_space<smem>>
    %131 = vector.broadcast %130 : f32 to vector<8x128xf32>
    %132 = arith.mulf %129, %131 : vector<8x128xf32>
    %133 = arith.addf %85, %132 : vector<8x128xf32>
    %c52 = arith.constant 52 : index
    %134 = memref.load %arg1[%c52] : memref<75xf32, #tpu.memory_space<smem>>
    %135 = vector.broadcast %134 : f32 to vector<8x128xf32>
    %136 = arith.mulf %129, %135 : vector<8x128xf32>
    %137 = arith.addf %89, %136 : vector<8x128xf32>
    %c53 = arith.constant 53 : index
    %138 = memref.load %arg1[%c53] : memref<75xf32, #tpu.memory_space<smem>>
    %139 = vector.broadcast %138 : f32 to vector<8x128xf32>
    %140 = arith.mulf %129, %139 : vector<8x128xf32>
    %141 = arith.addf %93, %140 : vector<8x128xf32>
    %c6 = arith.constant 6 : index
    %142 = memref.load %arg1[%c6] : memref<75xf32, #tpu.memory_space<smem>>
    %143 = vector.broadcast %142 : f32 to vector<8x128xf32>
    %144 = arith.mulf %1, %143 : vector<8x128xf32>
    %c18 = arith.constant 18 : index
    %145 = memref.load %arg1[%c18] : memref<75xf32, #tpu.memory_space<smem>>
    %146 = vector.broadcast %145 : f32 to vector<8x128xf32>
    %147 = arith.mulf %3, %146 : vector<8x128xf32>
    %148 = arith.addf %144, %147 : vector<8x128xf32>
    %c30 = arith.constant 30 : index
    %149 = memref.load %arg1[%c30] : memref<75xf32, #tpu.memory_space<smem>>
    %150 = vector.broadcast %149 : f32 to vector<8x128xf32>
    %151 = arith.addf %148, %150 : vector<8x128xf32>
    %cst_11 = arith.constant 0.000000e+00 : f32
    %152 = vector.broadcast %cst_11 : f32 to vector<8x128xf32>
    %153 = arith.maximumf %151, %152 : vector<8x128xf32>
    %c54 = arith.constant 54 : index
    %154 = memref.load %arg1[%c54] : memref<75xf32, #tpu.memory_space<smem>>
    %155 = vector.broadcast %154 : f32 to vector<8x128xf32>
    %156 = arith.mulf %153, %155 : vector<8x128xf32>
    %157 = arith.addf %109, %156 : vector<8x128xf32>
    %c55 = arith.constant 55 : index
    %158 = memref.load %arg1[%c55] : memref<75xf32, #tpu.memory_space<smem>>
    %159 = vector.broadcast %158 : f32 to vector<8x128xf32>
    %160 = arith.mulf %153, %159 : vector<8x128xf32>
    %161 = arith.addf %113, %160 : vector<8x128xf32>
    %c56 = arith.constant 56 : index
    %162 = memref.load %arg1[%c56] : memref<75xf32, #tpu.memory_space<smem>>
    %163 = vector.broadcast %162 : f32 to vector<8x128xf32>
    %164 = arith.mulf %153, %163 : vector<8x128xf32>
    %165 = arith.addf %117, %164 : vector<8x128xf32>
    %c7 = arith.constant 7 : index
    %166 = memref.load %arg1[%c7] : memref<75xf32, #tpu.memory_space<smem>>
    %167 = vector.broadcast %166 : f32 to vector<8x128xf32>
    %168 = arith.mulf %1, %167 : vector<8x128xf32>
    %c19 = arith.constant 19 : index
    %169 = memref.load %arg1[%c19] : memref<75xf32, #tpu.memory_space<smem>>
    %170 = vector.broadcast %169 : f32 to vector<8x128xf32>
    %171 = arith.mulf %3, %170 : vector<8x128xf32>
    %172 = arith.addf %168, %171 : vector<8x128xf32>
    %c31 = arith.constant 31 : index
    %173 = memref.load %arg1[%c31] : memref<75xf32, #tpu.memory_space<smem>>
    %174 = vector.broadcast %173 : f32 to vector<8x128xf32>
    %175 = arith.addf %172, %174 : vector<8x128xf32>
    %cst_12 = arith.constant 0.000000e+00 : f32
    %176 = vector.broadcast %cst_12 : f32 to vector<8x128xf32>
    %177 = arith.maximumf %175, %176 : vector<8x128xf32>
    %c57 = arith.constant 57 : index
    %178 = memref.load %arg1[%c57] : memref<75xf32, #tpu.memory_space<smem>>
    %179 = vector.broadcast %178 : f32 to vector<8x128xf32>
    %180 = arith.mulf %177, %179 : vector<8x128xf32>
    %181 = arith.addf %133, %180 : vector<8x128xf32>
    %c58 = arith.constant 58 : index
    %182 = memref.load %arg1[%c58] : memref<75xf32, #tpu.memory_space<smem>>
    %183 = vector.broadcast %182 : f32 to vector<8x128xf32>
    %184 = arith.mulf %177, %183 : vector<8x128xf32>
    %185 = arith.addf %137, %184 : vector<8x128xf32>
    %c59 = arith.constant 59 : index
    %186 = memref.load %arg1[%c59] : memref<75xf32, #tpu.memory_space<smem>>
    %187 = vector.broadcast %186 : f32 to vector<8x128xf32>
    %188 = arith.mulf %177, %187 : vector<8x128xf32>
    %189 = arith.addf %141, %188 : vector<8x128xf32>
    %c8 = arith.constant 8 : index
    %190 = memref.load %arg1[%c8] : memref<75xf32, #tpu.memory_space<smem>>
    %191 = vector.broadcast %190 : f32 to vector<8x128xf32>
    %192 = arith.mulf %1, %191 : vector<8x128xf32>
    %c20 = arith.constant 20 : index
    %193 = memref.load %arg1[%c20] : memref<75xf32, #tpu.memory_space<smem>>
    %194 = vector.broadcast %193 : f32 to vector<8x128xf32>
    %195 = arith.mulf %3, %194 : vector<8x128xf32>
    %196 = arith.addf %192, %195 : vector<8x128xf32>
    %c32 = arith.constant 32 : index
    %197 = memref.load %arg1[%c32] : memref<75xf32, #tpu.memory_space<smem>>
    %198 = vector.broadcast %197 : f32 to vector<8x128xf32>
    %199 = arith.addf %196, %198 : vector<8x128xf32>
    %cst_13 = arith.constant 0.000000e+00 : f32
    %200 = vector.broadcast %cst_13 : f32 to vector<8x128xf32>
    %201 = arith.maximumf %199, %200 : vector<8x128xf32>
    %c60 = arith.constant 60 : index
    %202 = memref.load %arg1[%c60] : memref<75xf32, #tpu.memory_space<smem>>
    %203 = vector.broadcast %202 : f32 to vector<8x128xf32>
    %204 = arith.mulf %201, %203 : vector<8x128xf32>
    %205 = arith.addf %157, %204 : vector<8x128xf32>
    %c61 = arith.constant 61 : index
    %206 = memref.load %arg1[%c61] : memref<75xf32, #tpu.memory_space<smem>>
    %207 = vector.broadcast %206 : f32 to vector<8x128xf32>
    %208 = arith.mulf %201, %207 : vector<8x128xf32>
    %209 = arith.addf %161, %208 : vector<8x128xf32>
    %c62 = arith.constant 62 : index
    %210 = memref.load %arg1[%c62] : memref<75xf32, #tpu.memory_space<smem>>
    %211 = vector.broadcast %210 : f32 to vector<8x128xf32>
    %212 = arith.mulf %201, %211 : vector<8x128xf32>
    %213 = arith.addf %165, %212 : vector<8x128xf32>
    %c9 = arith.constant 9 : index
    %214 = memref.load %arg1[%c9] : memref<75xf32, #tpu.memory_space<smem>>
    %215 = vector.broadcast %214 : f32 to vector<8x128xf32>
    %216 = arith.mulf %1, %215 : vector<8x128xf32>
    %c21 = arith.constant 21 : index
    %217 = memref.load %arg1[%c21] : memref<75xf32, #tpu.memory_space<smem>>
    %218 = vector.broadcast %217 : f32 to vector<8x128xf32>
    %219 = arith.mulf %3, %218 : vector<8x128xf32>
    %220 = arith.addf %216, %219 : vector<8x128xf32>
    %c33 = arith.constant 33 : index
    %221 = memref.load %arg1[%c33] : memref<75xf32, #tpu.memory_space<smem>>
    %222 = vector.broadcast %221 : f32 to vector<8x128xf32>
    %223 = arith.addf %220, %222 : vector<8x128xf32>
    %cst_14 = arith.constant 0.000000e+00 : f32
    %224 = vector.broadcast %cst_14 : f32 to vector<8x128xf32>
    %225 = arith.maximumf %223, %224 : vector<8x128xf32>
    %c63 = arith.constant 63 : index
    %226 = memref.load %arg1[%c63] : memref<75xf32, #tpu.memory_space<smem>>
    %227 = vector.broadcast %226 : f32 to vector<8x128xf32>
    %228 = arith.mulf %225, %227 : vector<8x128xf32>
    %229 = arith.addf %181, %228 : vector<8x128xf32>
    %c64 = arith.constant 64 : index
    %230 = memref.load %arg1[%c64] : memref<75xf32, #tpu.memory_space<smem>>
    %231 = vector.broadcast %230 : f32 to vector<8x128xf32>
    %232 = arith.mulf %225, %231 : vector<8x128xf32>
    %233 = arith.addf %185, %232 : vector<8x128xf32>
    %c65 = arith.constant 65 : index
    %234 = memref.load %arg1[%c65] : memref<75xf32, #tpu.memory_space<smem>>
    %235 = vector.broadcast %234 : f32 to vector<8x128xf32>
    %236 = arith.mulf %225, %235 : vector<8x128xf32>
    %237 = arith.addf %189, %236 : vector<8x128xf32>
    %c10 = arith.constant 10 : index
    %238 = memref.load %arg1[%c10] : memref<75xf32, #tpu.memory_space<smem>>
    %239 = vector.broadcast %238 : f32 to vector<8x128xf32>
    %240 = arith.mulf %1, %239 : vector<8x128xf32>
    %c22 = arith.constant 22 : index
    %241 = memref.load %arg1[%c22] : memref<75xf32, #tpu.memory_space<smem>>
    %242 = vector.broadcast %241 : f32 to vector<8x128xf32>
    %243 = arith.mulf %3, %242 : vector<8x128xf32>
    %244 = arith.addf %240, %243 : vector<8x128xf32>
    %c34 = arith.constant 34 : index
    %245 = memref.load %arg1[%c34] : memref<75xf32, #tpu.memory_space<smem>>
    %246 = vector.broadcast %245 : f32 to vector<8x128xf32>
    %247 = arith.addf %244, %246 : vector<8x128xf32>
    %cst_15 = arith.constant 0.000000e+00 : f32
    %248 = vector.broadcast %cst_15 : f32 to vector<8x128xf32>
    %249 = arith.maximumf %247, %248 : vector<8x128xf32>
    %c66 = arith.constant 66 : index
    %250 = memref.load %arg1[%c66] : memref<75xf32, #tpu.memory_space<smem>>
    %251 = vector.broadcast %250 : f32 to vector<8x128xf32>
    %252 = arith.mulf %249, %251 : vector<8x128xf32>
    %253 = arith.addf %205, %252 : vector<8x128xf32>
    %c67 = arith.constant 67 : index
    %254 = memref.load %arg1[%c67] : memref<75xf32, #tpu.memory_space<smem>>
    %255 = vector.broadcast %254 : f32 to vector<8x128xf32>
    %256 = arith.mulf %249, %255 : vector<8x128xf32>
    %257 = arith.addf %209, %256 : vector<8x128xf32>
    %c68 = arith.constant 68 : index
    %258 = memref.load %arg1[%c68] : memref<75xf32, #tpu.memory_space<smem>>
    %259 = vector.broadcast %258 : f32 to vector<8x128xf32>
    %260 = arith.mulf %249, %259 : vector<8x128xf32>
    %261 = arith.addf %213, %260 : vector<8x128xf32>
    %c11 = arith.constant 11 : index
    %262 = memref.load %arg1[%c11] : memref<75xf32, #tpu.memory_space<smem>>
    %263 = vector.broadcast %262 : f32 to vector<8x128xf32>
    %264 = arith.mulf %1, %263 : vector<8x128xf32>
    %c23 = arith.constant 23 : index
    %265 = memref.load %arg1[%c23] : memref<75xf32, #tpu.memory_space<smem>>
    %266 = vector.broadcast %265 : f32 to vector<8x128xf32>
    %267 = arith.mulf %3, %266 : vector<8x128xf32>
    %268 = arith.addf %264, %267 : vector<8x128xf32>
    %c35 = arith.constant 35 : index
    %269 = memref.load %arg1[%c35] : memref<75xf32, #tpu.memory_space<smem>>
    %270 = vector.broadcast %269 : f32 to vector<8x128xf32>
    %271 = arith.addf %268, %270 : vector<8x128xf32>
    %cst_16 = arith.constant 0.000000e+00 : f32
    %272 = vector.broadcast %cst_16 : f32 to vector<8x128xf32>
    %273 = arith.maximumf %271, %272 : vector<8x128xf32>
    %c69 = arith.constant 69 : index
    %274 = memref.load %arg1[%c69] : memref<75xf32, #tpu.memory_space<smem>>
    %275 = vector.broadcast %274 : f32 to vector<8x128xf32>
    %276 = arith.mulf %273, %275 : vector<8x128xf32>
    %277 = arith.addf %229, %276 : vector<8x128xf32>
    %c70 = arith.constant 70 : index
    %278 = memref.load %arg1[%c70] : memref<75xf32, #tpu.memory_space<smem>>
    %279 = vector.broadcast %278 : f32 to vector<8x128xf32>
    %280 = arith.mulf %273, %279 : vector<8x128xf32>
    %281 = arith.addf %233, %280 : vector<8x128xf32>
    %c71 = arith.constant 71 : index
    %282 = memref.load %arg1[%c71] : memref<75xf32, #tpu.memory_space<smem>>
    %283 = vector.broadcast %282 : f32 to vector<8x128xf32>
    %284 = arith.mulf %273, %283 : vector<8x128xf32>
    %285 = arith.addf %237, %284 : vector<8x128xf32>
    %286 = arith.addf %253, %277 : vector<8x128xf32>
    %c72 = arith.constant 72 : index
    %287 = memref.load %arg1[%c72] : memref<75xf32, #tpu.memory_space<smem>>
    %288 = vector.broadcast %287 : f32 to vector<8x128xf32>
    %289 = arith.addf %286, %288 : vector<8x128xf32>
    %c0_17 = arith.constant 0 : index
    %c0_18 = arith.constant 0 : index
    %c0_19 = arith.constant 0 : index
    %290 = vector.load %arg3[%c0_17, %c0_18, %c0_19] : memref<3x8x128xf32, #tpu.memory_space<vmem>>, vector<1x8x128xf32>
    %291 = vector.shape_cast %290 : vector<1x8x128xf32> to vector<8x128xf32>
    %292 = vector.shape_cast %289 : vector<8x128xf32> to vector<1x8x128xf32>
    tpu.vector_store %arg3[%c0_17, %c0_18, %c0_19], %292 {strides = array<i32>} : memref<3x8x128xf32, #tpu.memory_space<vmem>>, vector<1x8x128xf32>,
    %293 = arith.addf %257, %281 : vector<8x128xf32>
    %c73 = arith.constant 73 : index
    %294 = memref.load %arg1[%c73] : memref<75xf32, #tpu.memory_space<smem>>
    %295 = vector.broadcast %294 : f32 to vector<8x128xf32>
    %296 = arith.addf %293, %295 : vector<8x128xf32>
    %c1_20 = arith.constant 1 : index
    %c0_21 = arith.constant 0 : index
    %c0_22 = arith.constant 0 : index
    %297 = vector.load %arg3[%c1_20, %c0_21, %c0_22] : memref<3x8x128xf32, #tpu.memory_space<vmem>>, vector<1x8x128xf32>
    %298 = vector.shape_cast %297 : vector<1x8x128xf32> to vector<8x128xf32>
    %299 = vector.shape_cast %296 : vector<8x128xf32> to vector<1x8x128xf32>
    tpu.vector_store %arg3[%c1_20, %c0_21, %c0_22], %299 {strides = array<i32>} : memref<3x8x128xf32, #tpu.memory_space<vmem>>, vector<1x8x128xf32>,
    %300 = arith.addf %261, %285 : vector<8x128xf32>
    %c74 = arith.constant 74 : index
    %301 = memref.load %arg1[%c74] : memref<75xf32, #tpu.memory_space<smem>>
    %302 = vector.broadcast %301 : f32 to vector<8x128xf32>
    %303 = arith.addf %300, %302 : vector<8x128xf32>
    %c2_23 = arith.constant 2 : index
    %c0_24 = arith.constant 0 : index
    %c0_25 = arith.constant 0 : index
    %304 = vector.load %arg3[%c2_23, %c0_24, %c0_25] : memref<3x8x128xf32, #tpu.memory_space<vmem>>, vector<1x8x128xf32>
    %305 = vector.shape_cast %304 : vector<1x8x128xf32> to vector<8x128xf32>
    %306 = vector.shape_cast %303 : vector<8x128xf32> to vector<1x8x128xf32>
    tpu.vector_store %arg3[%c2_23, %c0_24, %c0_25], %306 {strides = array<i32>} : memref<3x8x128xf32, #tpu.memory_space<vmem>>, vector<1x8x128xf32>,
    return
  }
  func.func @transform_0(%arg0: i32, %arg1: memref<75xf32, #tpu.memory_space<smem>>) -> (i32, i32, i32) {
    %c0_i32 = arith.constant 0 : i32
    %c0_i32_0 = arith.constant 0 : i32
    %c0_i32_1 = arith.constant 0 : i32
    return %c0_i32, %arg0, %c0_i32_0 : i32, i32, i32
  }
  func.func @transform_1(%arg0: i32, %arg1: memref<75xf32, #tpu.memory_space<smem>>) -> (i32, i32, i32) {
    %c0_i32 = arith.constant 0 : i32
    %c0_i32_0 = arith.constant 0 : i32
    %c0_i32_1 = arith.constant 0 : i32
    return %c0_i32, %arg0, %c0_i32_0 : i32, i32, i32
  }
}

</mosaic_0001>

<bundles_post_ra>
// kernel: tpu_custom_call.1
= control target key start
LH: loop header
LB: loop body
LE: loop exit
PB: predicated region body
PF: predicated region fallthrough
CT: control target
= control target key end

     0   :  { %s468_s9 = smov [#allocation3]   ;;  %s705_s0 = inlined_call_operand.hbm [shape: f32[75], index: 0, kind: input, shape index: {}]   ;;  %s706_s1 = inlined_call_operand.hbm [shape: f32[2,8,128], index: 1, kind: input, shape index: {}]   ;;  %s707_s2 = inlined_call_operand.hbm [shape: f32[3,8,128], index: 2, kind: output, shape index: {}]  }
   0x1   :  { %8 = dma.hbm_to_smem %s705_s0, 16, %s468_s9, [#allocation2] }
   0x2   :  { %462 = dma.done.wait [#allocation2], 16 }
   0x3   :  { %463 = vsyncadd [#allocation2], 4294967280 }
   0x4   :  { %10 = sfence }
   0x5   :  { %11 = vsyncpa [#allocation5], 0 }
   0x6   :  { %12 = vsyncpa [#allocation6], 0  ;;  %s469_s12 = smov [#allocation4]  }
   0x7   :  { %s18_s13 = sshll.u32 %s469_s12, 4  ;;  %s19_s13 = int_to_ptr.vmem [resolvable:$true] %s18_s13 }
   0x8   :  { %s430_s14 = scalar_lea.vmem %s19_s13, 256  ;;  %p435_p1 = scmp.lt.s32.totalorder %s19_s13, %s19_s13 }
   0x9   :  { %p431_p0 = scmp.ne.s32.totalorder %s19_s13, %s430_s14  ;;  %p436_p2 = scmp.lt.s32.totalorder %s430_s14, %s430_s14 }
   0xb   :  { %p437_p3 = por %p436_p2, %p435_p1 }
   0xd   :  { %p438_p4 = pnand %p437_p3, %p431_p0 }
   0xf   :  { %441 = shalt.err (!%p438_p4)
}
  0x10   :  { %s470_s15 = smov 128   ;;  %s471_s16 = smov 8  }
  0x11   :  { %24 = dma.hbm_to_vmem [thread:$0]  %s706_s1, 256, %s19_s13, [#allocation5], %s470_s15, %s470_s15, %s471_s16  }
  0x12   :  { %464 = dma.done.wait [#allocation5], 256  }
  0x13   :  { %465 = vsyncadd [#allocation5], 4294967040  ;;  %s31_s18 = sld [smem:[#allocation3]]  ;;  %v521_v0 = vld [vmem:[#allocation4] sm:$0xff]  ;;  %v523_v1 = vld [vmem:[#allocation4 + $0x8] sm:$0xff] }
  0x14   :  { %s335_s19 = sld [smem:[#allocation3 + $0xc]] }
  0x15   :  { %s497_s20 = sld [smem:[#allocation3 + $0x18]] }
  0x16   :  { %s499_s21 = sld [smem:[#allocation3 + $0x24]] }
  0x17   :  { %s501_s22 = sld [smem:[#allocation3 + $0x1]] }
  0x18   :  { %s503_s23 = sld [smem:[#allocation3 + $0xd]] }
  0x19   :  { %s505_s24 = sld [smem:[#allocation3 + $0x19]]  ;;  %v32_v2 = vstv %s31_s18 }
  0x1a   :  { %s507_s25 = sld [smem:[#allocation3 + $0x27]]  ;;  %v35_v3 = vstv %s335_s19  ;;  %v33_v6 = vmul.f32 %v32_v2, %v521_v0 }
  0x1b   :  { %s346_s26 = sld [smem:[#allocation3 + $0x2]]  ;;  %v36_v7 = vmul.f32 %v35_v3, %v523_v1  ;;  %v39_v22 = vstv %s497_s20 }
  0x1c   :  { %s347_s27 = sld [smem:[#allocation3 + $0xe]]  ;;  %v43_v46 = vstv %s499_s21 }
  0x1d   :  { %s509_s28 = sld [smem:[#allocation3 + $0x1a]]  ;;  %v52_v8 = vstv %s501_s22  ;;  %v37_v18 = vadd.f32 %v36_v7, %v33_v6 }
  0x1e   :  { %s511_s1 = sld [smem:[#allocation3 + $0x2a]]  ;;  %v55_v9 = vstv %s503_s23  ;;  %v53_v15 = vmul.f32 %v52_v8, %v521_v0 }
  0x1f   :  { %s513_s29 = sld [smem:[#allocation3 + $0x3]]  ;;  %v56_v16 = vmul.f32 %v55_v9, %v523_v1  ;;  %v40_v29 = vadd.f32 %v39_v22, %v37_v18  ;;  %v59_v30 = vstv %s505_s24 }
  0x20   :  { %s515_s30 = sld [smem:[#allocation3 + $0xf]]  ;;  %v63_v55 = vstv %s507_s25 }
  0x21   :  { %s517_s3 = sld [smem:[#allocation3 + $0x1b]]  ;;  %v72_v4 = vstv %s346_s26  ;;  %v57_v27 = vadd.f32 %v56_v16, %v53_v15  ;;  %v570_v42 = vmax.f32 %v40_v29, 0.0 }
  0x22   :  { %s519_s4 = sld [smem:[#allocation3 + $0x2d]]  ;;  %v75_v5 = vstv %s347_s27  ;;  %v73_v10 = vmul.f32 %v72_v4, %v521_v0 }
  0x23   :  { %s358_s5 = sld [smem:[#allocation3 + $0x4]]  ;;  %v76_v11 = vmul.f32 %v75_v5, %v523_v1  ;;  %v79_v23 = vstv %s509_s28  ;;  %v60_v39 = vadd.f32 %v59_v30, %v57_v27  ;;  %v44_v58 = vmul.f32 %v43_v46, %v570_v42 }
  0x24   :  { %s359_s6 = sld [smem:[#allocation3 + $0x10]]  ;;  %v83_v47 = vstv %s511_s1 }
  0x25   :  { %s525_s7 = sld [smem:[#allocation3 + $0x1c]]  ;;  %v95_v12 = vstv %s513_s29  ;;  %v77_v19 = vadd.f32 %v76_v11, %v73_v10  ;;  %v586_v54 = vmax.f32 %v60_v39, 0.0 }
  0x26   :  { %s529_s8 = sld [smem:[#allocation3 + $0x30]]  ;;  %v98_v13 = vstv %s515_s30  ;;  %v96_v20 = vmul.f32 %v95_v12, %v521_v0 }
  0x27   :  { %s535_s9 = sld [smem:[#allocation3 + $0x5]]  ;;  %v99_v21 = vmul.f32 %v98_v13, %v523_v1  ;;  %v80_v31 = vadd.f32 %v79_v23, %v77_v19  ;;  %v102_v33 = vstv %s517_s3  ;;  %v64_v7 = vmul.f32 %v63_v55, %v586_v54 }
  0x28   :  { %s365_s10 = sld [smem:[#allocation3 + $0x11]]  ;;  %v106_v62 = vstv %s519_s4 }
  0x29   :  { %v118_v14 = vstv %s358_s5  ;;  %s539_s11 = sld [smem:[#allocation3 + $0x1d]]  ;;  %v100_v32 = vadd.f32 %v99_v21, %v96_v20  ;;  %v572_v43 = vmax.f32 %v80_v31, 0.0 }
  0x2a   :  { %v121_v17 = vstv %s359_s6  ;;  %s543_s12 = sld [smem:[#allocation3 + $0x33]]  ;;  %v119_v24 = vmul.f32 %v118_v14, %v521_v0 }
  0x2b   :  { %s370_s13 = sld [smem:[#allocation3 + $0x6]]  ;;  %v122_v25 = vmul.f32 %v121_v17, %v523_v1  ;;  %v125_v37 = vstv %s525_s7  ;;  %v103_v44 = vadd.f32 %v102_v33, %v100_v32  ;;  %v84_v59 = vmul.f32 %v83_v47, %v572_v43 }
  0x2c   :  { %s371_s14 = sld [smem:[#allocation3 + $0x12]]  ;;  %v129_v4 = vstv %s529_s8 }
  0x2d   :  { %v141_v26 = vstv %s535_s9  ;;  %s552_s0 = sld [smem:[#allocation3 + $0x1e]]  ;;  %v123_v34 = vadd.f32 %v122_v25, %v119_v24  ;;  %v595_v60 = vmax.f32 %v103_v44, 0.0  ;;  %v85_v11 = vadd.f32 %v84_v59, %v44_v58 }
  0x2e   :  { %v144_v28 = vstv %s365_s10  ;;  %s554_s17 = sld [smem:[#allocation3 + $0x36]]  ;;  %v142_v35 = vmul.f32 %v141_v26, %v521_v0 }
  0x2f   :  { %s557_s18 = sld [smem:[#allocation3 + $0x7]]  ;;  %v145_v36 = vmul.f32 %v144_v28, %v523_v1  ;;  %v126_v48 = vadd.f32 %v125_v37, %v123_v34  ;;  %v148_v50 = vstv %s539_s11  ;;  %v107_v12 = vmul.f32 %v106_v62, %v595_v60 }
  0x30   :  { %s562_s19 = sld [smem:[#allocation3 + $0x13]]  ;;  %v152_v13 = vstv %s543_s12 }
  0x31   :  { %v164_v38 = vstv %s370_s13  ;;  %s565_s20 = sld [smem:[#allocation3 + $0x1f]]  ;;  %v146_v49 = vadd.f32 %v145_v36, %v142_v35  ;;  %v599_v63 = vmax.f32 %v126_v48, 0.0  ;;  %v108_v25 = vadd.f32 %v107_v12, %v64_v7 }
  0x32   :  { %v165_v40 = vmul.f32 %v164_v38, %v521_v0  ;;  %v167_v41 = vstv %s371_s14  ;;  %s568_s22 = sld [smem:[#allocation3 + $0x39]] }
  0x33   :  { %v168_v45 = vmul.f32 %v167_v41, %v523_v1  ;;  %s575_s23 = sld [smem:[#allocation3 + $0x8]]  ;;  %v171_v52 = vstv %s552_s0  ;;  %v149_v2 = vadd.f32 %v148_v50, %v146_v49  ;;  %v130_v15 = vmul.f32 %v129_v4, %v599_v63 }
  0x34   :  { %s579_s24 = sld [smem:[#allocation3 + $0x14]]  ;;  %v175_v19 = vstv %s554_s17 }
  0x35   :  { %v169_v51 = vadd.f32 %v168_v45, %v165_v40  ;;  %v187_v53 = vstv %s557_s18  ;;  %s584_s26 = sld [smem:[#allocation3 + $0x20]]  ;;  %v615_v16 = vmax.f32 %v149_v2, 0.0  ;;  %v131_v28 = vadd.f32 %v130_v15, %v85_v11 }
  0x36   :  { %v188_v56 = vmul.f32 %v187_v53, %v521_v0  ;;  %v190_v57 = vstv %s562_s19  ;;  %s591_s21 = sld [smem:[#allocation3 + $0x3c]] }
  0x37   :  { %v191_v61 = vmul.f32 %v190_v57, %v523_v1  ;;  %s388_s27 = sld [smem:[#allocation3 + $0x9]]  ;;  %v172_v3 = vadd.f32 %v171_v52, %v169_v51  ;;  %v194_v8 = vstv %s565_s20  ;;  %v153_v29 = vmul.f32 %v152_v13, %v615_v16 }
  0x38   :  { %s389_s25 = sld [smem:[#allocation3 + $0x15]]  ;;  %v198_v35 = vstv %s568_s22 }
  0x39   :  { %v192_v5 = vadd.f32 %v191_v61, %v188_v56  ;;  %v210_v6 = vstv %s575_s23  ;;  %s603_s28 = sld [smem:[#allocation3 + $0x21]]  ;;  %v617_v17 = vmax.f32 %v172_v3, 0.0  ;;  %v154_v44 = vadd.f32 %v153_v29, %v108_v25 }
  0x3a   :  { %v211_v9 = vmul.f32 %v210_v6, %v521_v0  ;;  %v213_v10 = vstv %s579_s24  ;;  %s609_s1 = sld [smem:[#allocation3 + $0x3f]] }
  0x3b   :  { %v214_v14 = vmul.f32 %v213_v10, %v523_v1  ;;  %s394_s29 = sld [smem:[#allocation3 + $0xa]]  ;;  %v217_v18 = vstv %s584_s26  ;;  %v195_v20 = vadd.f32 %v194_v8, %v192_v5  ;;  %v176_v30 = vmul.f32 %v175_v19, %v617_v17 }
  0x3c   :  { %s395_s30 = sld [smem:[#allocation3 + $0x16]]  ;;  %v221_v39 = vstv %s591_s21 }
  0x3d   :  { %v215_v21 = vadd.f32 %v214_v14, %v211_v9  ;;  %v233_v22 = vstv %s388_s27  ;;  %s621_s3 = sld [smem:[#allocation3 + $0x22]]  ;;  %v632_v32 = vmax.f32 %v195_v20, 0.0  ;;  %v177_v45 = vadd.f32 %v176_v30, %v131_v28 }
  0x3e   :  { %v234_v23 = vmul.f32 %v233_v22, %v521_v0  ;;  %v236_v24 = vstv %s389_s25  ;;  %s624_s4 = sld [smem:[#allocation3 + $0x42]] }
  0x3f   :  { %v218_v26 = vadd.f32 %v217_v18, %v215_v21  ;;  %v237_v27 = vmul.f32 %v236_v24, %v523_v1  ;;  %s627_s5 = sld [smem:[#allocation3 + $0xb]]  ;;  %v240_v31 = vstv %s603_s28  ;;  %v199_v47 = vmul.f32 %v198_v35, %v632_v32 }
  0x40   :  { %s401_s6 = sld [smem:[#allocation3 + $0x17]]  ;;  %v244_v52 = vstv %s609_s1 }
  0x41   :  { %v238_v33 = vadd.f32 %v237_v27, %v234_v23  ;;  %v256_v34 = vstv %s394_s29  ;;  %s634_s7 = sld [smem:[#allocation3 + $0x23]]  ;;  %v637_v36 = vmax.f32 %v218_v26, 0.0  ;;  %v200_v61 = vadd.f32 %v199_v47, %v154_v44 }
  0x42   :  { %v257_v37 = vmul.f32 %v256_v34, %v521_v0  ;;  %v259_v38 = vstv %s395_s30  ;;  %s640_s8 = sld [smem:[#allocation3 + $0x45]] }
  0x43   :  { %v241_v40 = vadd.f32 %v240_v31, %v238_v33  ;;  %v260_v41 = vmul.f32 %v259_v38, %v523_v1  ;;  %s644_s9 = sld [smem:[#allocation3 + $0x48]]  ;;  %v263_v46 = vstv %s621_s3  ;;  %v222_v51 = vmul.f32 %v221_v39, %v637_v36 }
  0x44   :  { %s338_s10 = sld [smem:[#allocation3 + $0x25]]  ;;  %v267_v58 = vstv %s624_s4 }
  0x45   :  { %v648_v48 = vmax.f32 %v241_v40, 0.0  ;;  %v261_v49 = vadd.f32 %v260_v41, %v257_v37  ;;  %v279_v50 = vstv %s627_s5  ;;  %s344_s11 = sld [smem:[#allocation3 + $0x28]]  ;;  %v223_v4 = vadd.f32 %v222_v51, %v177_v45 }
  0x46   :  { %v280_v53 = vmul.f32 %v279_v50, %v521_v0  ;;  %v282_v55 = vstv %s401_s6  ;;  %s350_s12 = sld [smem:[#allocation3 + $0x2b]] }
  0x47   :  { %v264_v56 = vadd.f32 %v263_v46, %v261_v49  ;;  %v283_v57 = vmul.f32 %v282_v55, %v523_v1  ;;  %s356_s13 = sld [smem:[#allocation3 + $0x2e]]  ;;  %v286_v59 = vstv %s634_s7  ;;  %v245_v62 = vmul.f32 %v244_v52, %v648_v48 }
  0x48   :  { %s362_s14 = sld [smem:[#allocation3 + $0x31]]  ;;  %v290_v8 = vstv %s640_s8  ;;  %s472_s8 = smov [#allocation7]  }
  0x49   :  { %v658_v2 = vmax.f32 %v264_v56, 0.0  ;;  %v284_v3 = vadd.f32 %v283_v57, %v280_v53  ;;  %s368_s0 = sld [smem:[#allocation3 + $0x34]]  ;;  %v246_v11 = vadd.f32 %v245_v62, %v200_v61  ;;  %v303_v31 = vstv %s644_s9  ;;  %s323_s9 = sshll.u32 %s472_s8, 4  ;;  %s324_s9 = int_to_ptr.vmem [resolvable:$true] %s323_s9 }
  0x4a   :  { %v46_v5 = vstv %s338_s10  ;;  %s374_s17 = sld [smem:[#allocation3 + $0x37]]  ;;  %s442_s10 = scalar_lea.vmem %s324_s9, 384 }
  0x4b   :  { %v268_v0 = vmul.f32 %v267_v58, %v658_v2  ;;  %v287_v6 = vadd.f32 %v286_v59, %v284_v3  ;;  %v47_v1 = vmul.f32 %v46_v5, %v570_v42  ;;  %v66_v7 = vstv %s344_s11  ;;  %s380_s18 = sld [smem:[#allocation3 + $0x3a]]  ;;  %p443_p5 = scmp.ne.s32.totalorder %s324_s9, %s442_s10 }
  0x4c   :  { %v67_v9 = vmul.f32 %v66_v7, %v586_v54  ;;  %v87_v10 = vstv %s350_s12  ;;  %s664_s19 = sld [smem:[#allocation3 + $0x3d]]  ;;  %p447_p6 = scmp.lt.s32.totalorder %s324_s9, %s324_s9 }
  0x4d   :  { %v666_v12 = vmax.f32 %v287_v6, 0.0  ;;  %v88_v13 = vmul.f32 %v87_v10, %v572_v43  ;;  %v110_v14 = vstv %s356_s13  ;;  %s392_s20 = sld [smem:[#allocation3 + $0x40]]  ;;  %v269_v15 = vadd.f32 %v268_v0, %v223_v4  ;;  %p448_p7 = scmp.lt.s32.totalorder %s442_s10, %s442_s10 }
  0x4e   :  { %v111_v18 = vmul.f32 %v110_v14, %v595_v60  ;;  %v133_v19 = vstv %s362_s14  ;;  %s670_s22 = sld [smem:[#allocation3 + $0x43]] }
  0x4f   :  { %v291_v20 = vmul.f32 %v290_v8, %v666_v12  ;;  %v89_v21 = vadd.f32 %v88_v13, %v47_v1  ;;  %v134_v22 = vmul.f32 %v133_v19, %v599_v63  ;;  %v156_v23 = vstv %s368_s0  ;;  %s404_s23 = sld [smem:[#allocation3 + $0x46]]  ;;  %p449_p8 = por %p448_p7, %p447_p6 }
  0x50   :  { %v112_v24 = vadd.f32 %v111_v18, %v67_v9  ;;  %v157_v25 = vmul.f32 %v156_v23, %v615_v16  ;;  %v179_v26 = vstv %s374_s17  ;;  %s675_s24 = sld [smem:[#allocation3 + $0x49]] }
  0x51   :  { %v292_v27 = vadd.f32 %v291_v20, %v246_v11  ;;  %v135_v28 = vadd.f32 %v134_v22, %v89_v21  ;;  %v180_v29 = vmul.f32 %v179_v26, %v617_v17  ;;  %v202_v30 = vstv %s380_s18  ;;  %s339_s26 = sld [smem:[#allocation3 + $0x26]]  ;;  %p450_p9 = pnand %p449_p8, %p443_p5 }
  0x52   :  { %v158_v33 = vadd.f32 %v157_v25, %v112_v24  ;;  %v203_v34 = vmul.f32 %v202_v30, %v632_v32  ;;  %v225_v35 = vstv %s664_s19  ;;  %s345_s21 = sld [smem:[#allocation3 + $0x29]] }
  0x53   :  { %v301_v37 = vadd.f32 %v292_v27, %v269_v15  ;;  %v181_v38 = vadd.f32 %v180_v29, %v135_v28  ;;  %v226_v39 = vmul.f32 %v225_v35, %v637_v36  ;;  %v248_v40 = vstv %s392_s20  ;;  %s351_s27 = sld [smem:[#allocation3 + $0x2c]] }
  0x54   :  { %v204_v41 = vadd.f32 %v203_v34, %v158_v33  ;;  %v249_v44 = vmul.f32 %v248_v40, %v648_v48  ;;  %v271_v45 = vstv %s670_s22  ;;  %s357_s25 = sld [smem:[#allocation3 + $0x2f]] }
  0x55   :  { %v304_v46 = vadd.f32 %v303_v31, %v301_v37  ;;  %v227_v47 = vadd.f32 %v226_v39, %v181_v38  ;;  %v272_v49 = vmul.f32 %v271_v45, %v658_v2  ;;  %v294_v50 = vstv %s404_s23  ;;  %s363_s28 = sld [smem:[#allocation3 + $0x32]] }
  0x56   :  { %v250_v51 = vadd.f32 %v249_v44, %v204_v41  ;;  %v295_v52 = vmul.f32 %v294_v50, %v666_v12  ;;  %s369_s1 = sld [smem:[#allocation3 + $0x35]]  ;;  %v308_v59 = vstv %s675_s24 }
  0x57   :  { %305 = vst [vmem:[#allocation7] sm:$0xff] %v304_v46  ;;  %v273_v53 = vadd.f32 %v272_v49, %v227_v47  ;;  %v49_v55 = vstv %s339_s26  ;;  %s375_s29 = sld [smem:[#allocation3 + $0x38]] }
  0x58   :  { %v296_v56 = vadd.f32 %v295_v52, %v250_v51  ;;  %v50_v57 = vmul.f32 %v49_v55, %v570_v42  ;;  %v69_v58 = vstv %s345_s21  ;;  %s381_s30 = sld [smem:[#allocation3 + $0x3b]] }
  0x59   :  { %v70_v61 = vmul.f32 %v69_v58, %v586_v54  ;;  %v91_v62 = vstv %s351_s27  ;;  %s387_s3 = sld [smem:[#allocation3 + $0x3e]] }
  0x5a   :  { %v306_v3 = vadd.f32 %v296_v56, %v273_v53  ;;  %v92_v4 = vmul.f32 %v91_v62, %v572_v43  ;;  %v114_v5 = vstv %s357_s25  ;;  %s393_s4 = sld [smem:[#allocation3 + $0x41]] }
  0x5b   :  { %v115_v0 = vmul.f32 %v114_v5, %v595_v60  ;;  %v137_v6 = vstv %s363_s28  ;;  %s399_s5 = sld [smem:[#allocation3 + $0x44]] }
  0x5c   :  { %v309_v1 = vadd.f32 %v308_v59, %v306_v3  ;;  %v93_v7 = vadd.f32 %v92_v4, %v50_v57  ;;  %v138_v42 = vmul.f32 %v137_v6, %v599_v63  ;;  %v160_v8 = vstv %s369_s1  ;;  %s405_s6 = sld [smem:[#allocation3 + $0x47]] }
  0x5d   :  { %v116_v9 = vadd.f32 %v115_v0, %v70_v61  ;;  %v161_v54 = vmul.f32 %v160_v8, %v615_v16  ;;  %v183_v10 = vstv %s375_s29  ;;  %s408_s7 = sld [smem:[#allocation3 + $0x4a]] }
  0x5e   :  { %311 = vst [vmem:[#allocation7 + $0x8] sm:$0xff] %v309_v1  ;;  %v139_v11 = vadd.f32 %v138_v42, %v93_v7  ;;  %v184_v43 = vmul.f32 %v183_v10, %v617_v17  ;;  %v206_v13 = vstv %s381_s30 }
  0x5f   :  { %v162_v14 = vadd.f32 %v161_v54, %v116_v9  ;;  %v207_v60 = vmul.f32 %v206_v13, %v632_v32  ;;  %v229_v15 = vstv %s387_s3 }
  0x60   :  { %v185_v18 = vadd.f32 %v184_v43, %v139_v11  ;;  %v230_v19 = vmul.f32 %v229_v15, %v637_v36  ;;  %v252_v63 = vstv %s393_s4 }
  0x61   :  { %v208_v20 = vadd.f32 %v207_v60, %v162_v14  ;;  %v253_v21 = vmul.f32 %v252_v63, %v648_v48  ;;  %v275_v22 = vstv %s399_s5 }
  0x62   :  { %v231_v16 = vadd.f32 %v230_v19, %v185_v18  ;;  %v276_v23 = vmul.f32 %v275_v22, %v658_v2  ;;  %v298_v24 = vstv %s405_s6 }
  0x63   :  { %v254_v25 = vadd.f32 %v253_v21, %v208_v20  ;;  %v299_v17 = vmul.f32 %v298_v24, %v666_v12  ;;  %v314_v28 = vstv %s408_s7 }
  0x64   :  { %v277_v26 = vadd.f32 %v276_v23, %v231_v16 }
  0x65   :  { %v300_v27 = vadd.f32 %v299_v17, %v254_v25 }
  0x67   :  { %v312_v32 = vadd.f32 %v300_v27, %v277_v26 }
  0x69   :  { %v315_v29 = vadd.f32 %v314_v28, %v312_v32 }
  0x6b   :  { %317 = vst [vmem:[#allocation7 + $0x10] sm:$0xff] %v315_v29 }
  0x6c   :  { %453 = shalt.err (!%p450_p9)
}
  0x6d   :  { %329 = dma.vmem_to_hbm [thread:$0]  %s324_s9, 384, %s707_s2, [#allocation6], %s470_s15, %s470_s15, %s471_s16  }
  0x6e   :  { %466 = dma.done.wait [#allocation6], 384  }
  0x6f   :  { %467 = vsyncadd [#allocation6], 4294966912 }
  0x70   :  { %333 = vsyncpa [#allocation5], 1 }
  0x71   :  { %334 = vsyncpa [#allocation6], 1 }

</bundles_post_ra>
